<compile_context>
chip_gen: v7x
topology: tpu7x:2x2x1
jax: 0.10.0
libtpu: 0.0.40
codegen_flags: <defaults>
</compile_context>

<pallas_src>
import functools

import jax
import jax.numpy as jnp
from jax.experimental import pallas as pl
from jax.experimental.pallas import tpu as pltpu


def _round_up(n, m):
    return ((n + m - 1) // m) * m


def mlp_kernel(x_ref, w1_ref, b1_ref, w2_ref, b2_ref, o_ref):
    # Shapes inside the kernel (feature-major, batch on the lane axis):
    #   x_ref  : (4, TB)    w1_ref : (50, 4)   b1_ref : (50, 1)
    #   w2_ref : (50, 1)    b2_ref : (1, 1)    o_ref  : (1, TB)
    x = x_ref[...]
    w1 = w1_ref[...]
    b1 = b1_ref[...]
    w2 = w2_ref[...]
    b2 = b2_ref[...]

    # Layer 1: h[j, b] = sum_k w1[j, k] * x[k, b] + b1[j]
    # K = 4 -> four broadcast FMAs on the VPU (no MXU), result (50, TB).
    h = b1 + w1[:, 0:1] * x[0:1, :]
    for k in range(1, x.shape[0]):                      # static unroll, K = 4
        h = h + w1[:, k:k + 1] * x[k:k + 1, :]
    h = jnp.maximum(h, 0.0)                             # ReLU

    # Layer 2: y[0, b] = sum_j w2[j] * h[j, b] + b2
    # Lane-wise multiply (VPU) + sublane reduction (XLU), result (1, TB).
    y = jnp.sum(h * w2, axis=0, keepdims=True) + b2

    o_ref[...] = jax.nn.sigmoid(y)                      # exact sigmoid (EUP exp)


@functools.partial(jax.jit, static_argnames=("max_tb",))
def red_neuronal_forward(x, w1, b1, w2, b2, *, max_tb=2048):
    """x: (B, 4); w1: (50, 4); b1: (50,); w2: (1, 50); b2: (1,). Returns (B, 1)."""
    B, F = x.shape
    H = w1.shape[0]

    # Lane-dense batch tile: multiple of 128, capped at max_tb; pad B up to it.
    tb = min(max_tb, _round_up(B, 128))
    Bp = _round_up(B, tb)

    # Glue: feature-major (F, Bp) input (zero-padded tail columns), column vectors
    # for the per-row weights/biases.
    xt = jnp.pad(x.T.astype(jnp.float32), ((0, 0), (0, Bp - B)))   # (4, Bp)
    w1_f = w1.astype(jnp.float32)                                   # (50, 4)
    b1_c = b1.reshape(H, 1).astype(jnp.float32)                     # (50, 1)
    w2_c = w2.astype(jnp.float32).reshape(1, H).T                   # (50, 1)
    b2_c = b2.reshape(1, 1).astype(jnp.float32)                     # (1, 1)

    grid = (Bp // tb,)
    out = pl.pallas_call(
        mlp_kernel,
        out_shape=jax.ShapeDtypeStruct((1, Bp), jnp.float32),
        grid=grid,
        in_specs=[
            pl.BlockSpec((F, tb), lambda i: (0, i)),    # x tile, pipelined over batch
            pl.BlockSpec((H, F), lambda i: (0, 0)),     # W1 resident in VMEM
            pl.BlockSpec((H, 1), lambda i: (0, 0)),     # b1 resident
            pl.BlockSpec((H, 1), lambda i: (0, 0)),     # W2 resident
            pl.BlockSpec((1, 1), lambda i: (0, 0)),     # b2 resident
        ],
        out_specs=pl.BlockSpec((1, tb), lambda i: (0, i)),  # lane-dense output
        compiler_params=pltpu.CompilerParams(
            dimension_semantics=("parallel",),          # batch tiles are independent
        ),
    )(xt, w1_f, b1_c, w2_c, b2_c)

    return out[0, :B].reshape(B, 1)


def torch_style_linear_init(key, out_features, in_features):
    """Deterministic U(-k, k) init with k = 1/sqrt(in_features) (like nn.Linear)."""
    kw, kb = jax.random.split(key)
    bound = 1.0 / jnp.sqrt(jnp.float32(in_features))
    w = jax.random.uniform(kw, (out_features, in_features), jnp.float32,
                           minval=-bound, maxval=bound)
    b = jax.random.uniform(kb, (out_features,), jnp.float32,
                           minval=-bound, maxval=bound)
    return w, b


def _reference(x, w1, b1, w2, b2):
    return jax.nn.sigmoid(jnp.maximum(x @ w1.T + b1, 0.0) @ w2.T + b2)


if __name__ == "__main__":
    key = jax.random.PRNGKey(0)
    k_x, k_x2, k_fc1, k_fc2 = jax.random.split(key, 4)

    w1, b1 = torch_style_linear_init(k_fc1, 50, 4)   # fc1: Linear(4, 50)
    w2, b2 = torch_style_linear_init(k_fc2, 1, 50)   # fc2: Linear(50, 1)

    # Small demo batch.
    B = 8
    x = jax.random.normal(k_x, (B, 4), dtype=jnp.float32)
    out = jax.block_until_ready(red_neuronal_forward(x, w1, b1, w2, b2))
    ref = _reference(x, w1, b1, w2, b2)
    assert out.shape == (B, 1)
    assert jnp.allclose(out, ref, atol=1e-5, rtol=1e-5)

    # Second check: batch not a multiple of the lane tile, exercises tail padding.
    B2 = 300
    x2 = jax.random.normal(k_x2, (B2, 4), dtype=jnp.float32)
    out2 = jax.block_until_ready(red_neuronal_forward(x2, w1, b1, w2, b2))
    ref2 = _reference(x2, w1, b1, w2, b2)
    assert out2.shape == (B2, 1)
    assert jnp.allclose(out2, ref2, atol=1e-5, rtol=1e-5)

    print("KERNEL_OK")
</pallas_src>

<mosaic_0001>
module attributes {stable_mosaic.version = 11 : i64} {
  func.func @mlp_kernel(%arg0: i32, %arg1: memref<4x128xf32, #tpu.memory_space<vmem>>, %arg2: memref<50x4xf32, #tpu.memory_space<vmem>>, %arg3: memref<50x1xf32, #tpu.memory_space<vmem>>, %arg4: memref<50x1xf32, #tpu.memory_space<vmem>>, %arg5: memref<1x1xf32, #tpu.memory_space<vmem>>, %arg6: memref<1x128xf32, #tpu.memory_space<vmem>>) attributes {dimension_semantics = [#tpu.dimension_semantics<parallel>], iteration_bounds = array<i64: 1>, scalar_prefetch = 0 : i64, scratch_operands = 0 : i64, tpu.core_type = #tpu.core_type<tc>, window_params = [{transform_indices = @transform_0, window_bounds = array<i64: 4, 128>}, {pipeline_mode = #tpu.pipeline_mode<synchronous>, transform_indices = @transform_1, window_bounds = array<i64: 50, 4>}, {pipeline_mode = #tpu.pipeline_mode<synchronous>, transform_indices = @transform_2, window_bounds = array<i64: 50, 1>}, {pipeline_mode = #tpu.pipeline_mode<synchronous>, transform_indices = @transform_3, window_bounds = array<i64: 50, 1>}, {pipeline_mode = #tpu.pipeline_mode<synchronous>, transform_indices = @transform_4, window_bounds = array<i64: 1, 1>}, {transform_indices = @transform_5, window_bounds = array<i64: 1, 128>}]} {
    %c0 = arith.constant 0 : index
    %c0_0 = arith.constant 0 : index
    %0 = vector.load %arg1[%c0, %c0_0] : memref<4x128xf32, #tpu.memory_space<vmem>>, vector<4x128xf32>
    %c0_1 = arith.constant 0 : index
    %c0_2 = arith.constant 0 : index
    %1 = vector.load %arg2[%c0_1, %c0_2] : memref<50x4xf32, #tpu.memory_space<vmem>>, vector<50x4xf32>
    %c0_3 = arith.constant 0 : index
    %c0_4 = arith.constant 0 : index
    %2 = vector.load %arg3[%c0_3, %c0_4] : memref<50x1xf32, #tpu.memory_space<vmem>>, vector<50x1xf32>
    %c0_5 = arith.constant 0 : index
    %c0_6 = arith.constant 0 : index
    %3 = vector.load %arg4[%c0_5, %c0_6] : memref<50x1xf32, #tpu.memory_space<vmem>>, vector<50x1xf32>
    %c0_7 = arith.constant 0 : index
    %c0_8 = arith.constant 0 : index
    %4 = vector.load %arg5[%c0_7, %c0_8] : memref<1x1xf32, #tpu.memory_space<vmem>>, vector<1x1xf32>
    %5 = vector.extract_strided_slice %1 {offsets = [0, 0], sizes = [50, 1], strides = [1, 1]} : vector<50x4xf32> to vector<50x1xf32>
    %6 = vector.extract_strided_slice %0 {offsets = [0, 0], sizes = [1, 128], strides = [1, 1]} : vector<4x128xf32> to vector<1x128xf32>
    %7 = vector.broadcast %5 : vector<50x1xf32> to vector<50x128xf32>
    %8 = vector.broadcast %6 : vector<1x128xf32> to vector<50x128xf32>
    %9 = arith.mulf %7, %8 : vector<50x128xf32>
    %10 = vector.broadcast %2 : vector<50x1xf32> to vector<50x128xf32>
    %11 = arith.addf %10, %9 : vector<50x128xf32>
    %12 = vector.extract_strided_slice %1 {offsets = [0, 1], sizes = [50, 1], strides = [1, 1]} : vector<50x4xf32> to vector<50x1xf32>
    %13 = vector.extract_strided_slice %0 {offsets = [1, 0], sizes = [1, 128], strides = [1, 1]} : vector<4x128xf32> to vector<1x128xf32>
    %14 = vector.broadcast %12 : vector<50x1xf32> to vector<50x128xf32>
    %15 = vector.broadcast %13 : vector<1x128xf32> to vector<50x128xf32>
    %16 = arith.mulf %14, %15 : vector<50x128xf32>
    %17 = arith.addf %11, %16 : vector<50x128xf32>
    %18 = vector.extract_strided_slice %1 {offsets = [0, 2], sizes = [50, 1], strides = [1, 1]} : vector<50x4xf32> to vector<50x1xf32>
    %19 = vector.extract_strided_slice %0 {offsets = [2, 0], sizes = [1, 128], strides = [1, 1]} : vector<4x128xf32> to vector<1x128xf32>
    %20 = vector.broadcast %18 : vector<50x1xf32> to vector<50x128xf32>
    %21 = vector.broadcast %19 : vector<1x128xf32> to vector<50x128xf32>
    %22 = arith.mulf %20, %21 : vector<50x128xf32>
    %23 = arith.addf %17, %22 : vector<50x128xf32>
    %24 = vector.extract_strided_slice %1 {offsets = [0, 3], sizes = [50, 1], strides = [1, 1]} : vector<50x4xf32> to vector<50x1xf32>
    %25 = vector.extract_strided_slice %0 {offsets = [3, 0], sizes = [1, 128], strides = [1, 1]} : vector<4x128xf32> to vector<1x128xf32>
    %26 = vector.broadcast %24 : vector<50x1xf32> to vector<50x128xf32>
    %27 = vector.broadcast %25 : vector<1x128xf32> to vector<50x128xf32>
    %28 = arith.mulf %26, %27 : vector<50x128xf32>
    %29 = arith.addf %23, %28 : vector<50x128xf32>
    %cst = arith.constant 0.000000e+00 : f32
    %30 = vector.broadcast %cst : f32 to vector<50x128xf32>
    %31 = arith.maximumf %29, %30 : vector<50x128xf32>
    %32 = vector.broadcast %3 : vector<50x1xf32> to vector<50x128xf32>
    %33 = arith.mulf %31, %32 : vector<50x128xf32>
    %cst_9 = arith.constant dense<0.000000e+00> : vector<128xf32>
    %34 = vector.multi_reduction <add>, %33, %cst_9 [0] : vector<50x128xf32> to vector<128xf32>
    %35 = vector.shape_cast %34 : vector<128xf32> to vector<1x128xf32>
    %36 = vector.broadcast %4 : vector<1x1xf32> to vector<1x128xf32>
    %37 = arith.addf %35, %36 : vector<1x128xf32>
    %38 = arith.negf %37 : vector<1x128xf32>
    %39 = math.exp %38 : vector<1x128xf32>
    %cst_10 = arith.constant 1.000000e+00 : f32
    %40 = vector.broadcast %cst_10 : f32 to vector<1x128xf32>
    %41 = arith.addf %40, %39 : vector<1x128xf32>
    %42 = arith.divf %40, %41 : vector<1x128xf32>
    %c0_11 = arith.constant 0 : index
    %c0_12 = arith.constant 0 : index
    %43 = vector.load %arg6[%c0_11, %c0_12] : memref<1x128xf32, #tpu.memory_space<vmem>>, vector<1x128xf32>
    tpu.vector_store %arg6[%c0_11, %c0_12], %42 {strides = array<i32>} : memref<1x128xf32, #tpu.memory_space<vmem>>, vector<1x128xf32>,
    return
  }
  func.func @transform_0(%arg0: i32) -> (i32, i32) {
    %c0_i32 = arith.constant 0 : i32
    %c0_i32_0 = arith.constant 0 : i32
    return %c0_i32, %arg0 : i32, i32
  }
  func.func @transform_1(%arg0: i32) -> (i32, i32) {
    %c0_i32 = arith.constant 0 : i32
    %c0_i32_0 = arith.constant 0 : i32
    %c0_i32_1 = arith.constant 0 : i32
    return %c0_i32, %c0_i32_0 : i32, i32
  }
  func.func @transform_2(%arg0: i32) -> (i32, i32) {
    %c0_i32 = arith.constant 0 : i32
    %c0_i32_0 = arith.constant 0 : i32
    %c0_i32_1 = arith.constant 0 : i32
    return %c0_i32, %c0_i32_0 : i32, i32
  }
  func.func @transform_3(%arg0: i32) -> (i32, i32) {
    %c0_i32 = arith.constant 0 : i32
    %c0_i32_0 = arith.constant 0 : i32
    %c0_i32_1 = arith.constant 0 : i32
    return %c0_i32, %c0_i32_0 : i32, i32
  }
  func.func @transform_4(%arg0: i32) -> (i32, i32) {
    %c0_i32 = arith.constant 0 : i32
    %c0_i32_0 = arith.constant 0 : i32
    %c0_i32_1 = arith.constant 0 : i32
    return %c0_i32, %c0_i32_0 : i32, i32
  }
  func.func @transform_5(%arg0: i32) -> (i32, i32) {
    %c0_i32 = arith.constant 0 : i32
    %c0_i32_0 = arith.constant 0 : i32
    return %c0_i32, %arg0 : i32, i32
  }
}

</mosaic_0001>

<bundles_post_ra>
// kernel: red_neuronal_forward.1
= control target key start
LH: loop header
LB: loop body
LE: loop exit
PB: predicated region body
PF: predicated region fallthrough
CT: control target
= control target key end

     0   :  { %v386_v0 = vmov 1   ;;  %v387_v1 = vmov 0   ;;  %v388_v9 = vmov 3   ;;  %v389_v12 = vmov 2   ;;  %s590_s1 = inlined_call_operand.vmem [shape: f32[50,4], index: 1, kind: input, shape index: {}]   ;;  %s591_s4 = inlined_call_operand.<no memory space> [shape: f32[1,1], index: 4, kind: input, shape index: {}]   ;;  %s592_s2 = inlined_call_operand.vmem [shape: f32[50,1], index: 2, kind: input, shape index: {}]   ;;  %s593_s3 = inlined_call_operand.vmem [shape: f32[50,1], index: 3, kind: input, shape index: {}]   ;;  %s594_s0 = inlined_call_operand.vmem [shape: f32[4,128], index: 0, kind: input, shape index: {}]   ;;  %s595_s5 = inlined_call_operand.vmem [shape: f32[1,128], index: 5, kind: output, shape index: {}]  }
   0x1   :  { %362 = vset.pattern.permute.xlu0 %v386_v0  ;;  %360 = vset.pattern.permute.xlu1 %v387_v1  ;;  %v25_v2 = vld [vmem:[%s590_s1 + $0x10] sm:$0xff]  ;;  %v24_v3 = vld [vmem:[%s590_s1 + $0x8] sm:$0xff]  ;;  %v10_v4 = vstv %s591_s4  ;;  %v26_v5 = vld [vmem:[%s590_s1 + $0x18] sm:$0xff]  ;;  %v80_v48 = vlaneseq  ;;  %vm325_vm0 = vcmask 1041408  }
   0x2   :  { %57 = vperm.xlu1 %360, %v25_v2   ;;  %138 = vperm.xlu0 %362, %v24_v3   ;;  %11 = vst [vmem:[#allocation2] sm:$0x1] %v10_v4  ;;  %v437_v6 = vld [vmem:[%s590_s1 + $0x20] sm:$0xff]  ;;  %v443_v7 = vld [vmem:[%s590_s1 + $0x28] sm:$0xff]  ;;  %v32_v11 = vld [vmem:[%s592_s2 + $0x10] sm:$0xff] }
   0x3   :  { %v23_v8 = vld [vmem:[%s590_s1] sm:$0xff]  ;;  %v29_v13 = vld [vmem:[%s590_s1 + $0x30] sm:$0x3]  ;;  %v31_v14 = vld [vmem:[%s592_s2 + $0x8] sm:$0xff]  ;;  %v528_v51 = vshrl.u32 %v80_v48, 7 }
   0x4   :  { %v30_v10 = vld [vmem:[%s592_s2] sm:$0xff]  ;;  %v33_v15 = vld [vmem:[%s592_s2 + $0x18] sm:$0xff]  ;;  %v35_v17 = vld [vmem:[%s592_s2 + $0x28] sm:$0xff] }
   0x5   :  { %v34_v16 = vld [vmem:[%s592_s2 + $0x20] sm:$0xff]  ;;  %v38_v18 = vld [vmem:[%s593_s3 + $0x8] sm:$0xff]  ;;  %v39_v19 = vld [vmem:[%s593_s3 + $0x10] sm:$0xff]  ;;  %v82_v54 = vsub.s32 0, %v528_v51  ;;  %v163_v58 = vsub.s32 1, %v528_v51  ;;  %v209_v60 = vsub.s32 2, %v528_v51 }
   0x6   :  { %62 = vperm.xlu1 %360, %v26_v5   ;;  %150 = vperm.xlu0 %362, %v437_v6   ;;  %v40_v20 = vld [vmem:[%s593_s3 + $0x18] sm:$0xff]  ;;  %v42_v21 = vld [vmem:[%s593_s3 + $0x28] sm:$0xff]  ;;  %v36_v23 = vld [vmem:[%s592_s2 + $0x30] sm:$0x3] }
   0x7   :  { %v37_v24 = vld [vmem:[%s593_s3] sm:$0xff]  ;;  %v43_v26 = vld [vmem:[%s593_s3 + $0x30] sm:$0x3] }
   0x8   :  { %v41_v25 = vld [vmem:[%s593_s3 + $0x20] sm:$0xff] }
   0x9   :  { %v44_v22 = vld [vmem:[#allocation2] sm:$0x1] }
   0xa   :  { %72 = vperm.xlu1 %360, %v443_v7   ;;  %368 = vset.pattern.permute.xlu0 %v388_v9  ;;  %v22_v55 = vld [vmem:[%s594_s0] sm:$0xf] }
   0xb   :  { %226 = vperm.xlu0 %368, %v23_v8   ;;  %v536_v57 = vrot.slane %v22_v55, %v82_v54 }
   0xe   :  { %93 = vperm.xlu1 %360, %v30_v10  }
   0xf   :  { %238 = vperm.xlu0 %368, %v26_v5  }
  0x12   :  { %103 = vperm.xlu1 %360, %v32_v11  }
  0x13   :  { %373 = vset.pattern.permute.xlu0 %v389_v12 }
  0x14   :  { %184 = vperm.xlu0 %373, %v24_v3  }
  0x16   :  { %361 = vset.pattern.permute.xlu1 %v386_v0 }
  0x17   :  { %134 = vperm.xlu1 %361, %v23_v8  }
  0x18   :  { %200 = vperm.xlu0 %373, %v443_v7  }
  0x1b   :  { %142 = vperm.xlu1 %361, %v25_v2  }
  0x1c   :  { %376 = vset.pattern.permute.xlu0 %v387_v1 }
  0x1d   :  { %47 = vperm.xlu0 %376, %v23_v8  }
  0x1f   :  { %363 = vset.pattern.permute.xlu1 %v389_v12 }
  0x20   :  { %180 = vperm.xlu1 %363, %v23_v8  }
  0x21   :  { %52 = vperm.xlu0 %376, %v24_v3  }
  0x24   :  { %364 = vset.pattern.permute.xlu1 %v386_v0 }
  0x25   :  { %67 = vperm.xlu0 %376, %v437_v6   ;;  %146 = vperm.xlu1 %364, %v26_v5  }
  0x29   :  { %77 = vperm.xlu0 %376, %v29_v13   ;;  %365 = vset.pattern.permute.xlu1 %v389_v12 }
  0x2a   :  { %188 = vperm.xlu1 %365, %v25_v2  }
  0x2d   :  { %98 = vperm.xlu0 %376, %v31_v14  }
  0x2e   :  { %366 = vset.pattern.permute.xlu1 %v388_v9 }
  0x2f   :  { %230 = vperm.xlu1 %366, %v24_v3   ;;  %v548_v3 = vrot.slane %v22_v55, %v209_v60 }
  0x31   :  { %108 = vperm.xlu0 %376, %v33_v15  }
  0x33   :  { %367 = vset.pattern.permute.xlu1 %v387_v1 }
  0x34   :  { %113 = vperm.xlu1 %367, %v34_v16  }
  0x35   :  { %118 = vperm.xlu0 %376, %v35_v17  }
  0x38   :  { %369 = vset.pattern.permute.xlu1 %v389_v12 }
  0x39   :  { %285 = vperm.xlu0 %376, %v38_v18   ;;  %192 = vperm.xlu1 %369, %v26_v5  }
  0x3d   :  { %290 = vperm.xlu0 %376, %v39_v19   ;;  %370 = vset.pattern.permute.xlu1 %v388_v9 }
  0x3e   :  { %234 = vperm.xlu1 %370, %v25_v2  }
  0x41   :  { %295 = vperm.xlu0 %376, %v40_v20  }
  0x42   :  { %371 = vset.pattern.permute.xlu1 %v386_v0 }
  0x43   :  { %154 = vperm.xlu1 %371, %v443_v7  }
  0x45   :  { %305 = vperm.xlu0 %376, %v42_v21  }
  0x47   :  { %372 = vset.pattern.permute.xlu1 %v389_v12 }
  0x48   :  { %196 = vperm.xlu1 %372, %v437_v6  }
  0x49   :  { %336 = vperm.xlu0 %376, %v44_v22  }
  0x4c   :  { %374 = vset.pattern.permute.xlu1 %v387_v1 }
  0x4d   :  { %123 = vperm.xlu1 %374, %v36_v23  }
  0x51   :  { %375 = vset.pattern.permute.xlu1 %v386_v0  ;;  %v544_v0 = vrot.slane %v22_v55, %v163_v58 }
  0x52   :  { %158 = vperm.xlu1 %375, %v29_v13  }
  0x56   :  { %377 = vset.pattern.permute.xlu1 %v388_v9 }
  0x57   :  { %242 = vperm.xlu1 %377, %v437_v6  }
  0x5b   :  { %378 = vset.pattern.permute.xlu1 %v387_v1 }
  0x5c   :  { %280 = vperm.xlu1 %378, %v37_v24  }
  0x60   :  { %379 = vset.pattern.permute.xlu1 %v389_v12 }
  0x61   :  { %204 = vperm.xlu1 %379, %v29_v13  }
  0x65   :  { %380 = vset.pattern.permute.xlu1 %v388_v9 }
  0x66   :  { %246 = vperm.xlu1 %380, %v443_v7  }
  0x6a   :  { %250 = vperm.xlu1 %380, %v29_v13  }
  0x6e   :  { %381 = vset.pattern.permute.xlu1 %v387_v1  ;;  %v255_v1 = vsub.s32 3, %v528_v51 }
  0x6f   :  { %300 = vperm.xlu1 %381, %v41_v25  }
  0x70   :  { %v553_v11 = vrot.slane %v22_v55, %v255_v1 }
  0x73   :  { %310 = vperm.xlu1 %381, %v43_v26  }
  0x81   :  { %v58_v27 = vpop.permute.xlu1 %57  ;;  %v139_v28 = vpop.permute.xlu0 %138 }
  0x82   :  { %v166_v2 = vmul.f32 %v544_v0, %v139_v28  ;;  %v86_v10 = vmul.f32 %v536_v57, %v58_v27 }
  0x85   :  { %v63_v29 = vpop.permute.xlu1 %62  ;;  %v514_v30 = vpop.permute.xlu0 %150 }
  0x86   :  { %v87_v7 = vmul.f32 %v536_v57, %v63_v29 }
  0x89   :  { %v516_v31 = vpop.permute.xlu1 %72 }
  0x8a   :  { %v227_v33 = vpop.permute.xlu0 %226 }
  0x8b   :  { %v257_v22 = vmul.f32 %v553_v11, %v227_v33 }
  0x8d   :  { %v94_v32 = vpop.permute.xlu1 %93 }
  0x8e   :  { %v518_v35 = vpop.permute.xlu0 %238 }
  0x91   :  { %v104_v34 = vpop.permute.xlu1 %103 }
  0x92   :  { %v128_v18 = vadd.f32 %v104_v34, %v86_v10  ;;  %v169_v10 = vmul.f32 %v544_v0, %v514_v30 }
  0x93   :  { %v185_v38 = vpop.permute.xlu0 %184 }
  0x94   :  { %v212_v12 = vmul.f32 %v548_v3, %v185_v38 }
  0x96   :  { %v135_v36 = vpop.permute.xlu1 %134 }
  0x97   :  { %v520_v40 = vpop.permute.xlu0 %200  ;;  %v165_v8 = vmul.f32 %v544_v0, %v135_v36 }
  0x9a   :  { %v143_v37 = vpop.permute.xlu1 %142 }
  0x9b   :  { %v167_v13 = vmul.f32 %v544_v0, %v143_v37  ;;  %v260_v37 = vmul.f32 %v553_v11, %v518_v35  ;;  %v89_v35 = vmul.f32 %v536_v57, %v516_v31  ;;  %v216_v31 = vmul.f32 %v548_v3, %v520_v40 }
  0x9c   :  { %v48_v42 = vpop.permute.xlu0 %47 }
  0x9d   :  { %v84_v61 = vmul.f32 %v536_v57, %v48_v42  ;;  %v174_v23 = vadd.f32 %v167_v13, %v128_v18 }
  0x9f   :  { %v181_v39 = vpop.permute.xlu1 %180  ;;  %v126_v4 = vadd.f32 %v94_v32, %v84_v61 }
  0xa0   :  { %v53_v44 = vpop.permute.xlu0 %52  ;;  %v211_v15 = vmul.f32 %v548_v3, %v181_v39 }
  0xa1   :  { %v85_v62 = vmul.f32 %v536_v57, %v53_v44  ;;  %v172_v14 = vadd.f32 %v165_v8, %v126_v4 }
  0xa3   :  { %v218_v26 = vadd.f32 %v211_v15, %v172_v14 }
  0xa4   :  { %v147_v41 = vpop.permute.xlu1 %146  ;;  %v522_v46 = vpop.permute.xlu0 %67 }
  0xa5   :  { %v168_v19 = vmul.f32 %v544_v0, %v147_v41  ;;  %v264_v42 = vadd.f32 %v257_v22, %v218_v26 }
  0xa8   :  { %v526_v50 = vpop.permute.xlu0 %77 }
  0xa9   :  { %v189_v43 = vpop.permute.xlu1 %188 }
  0xaa   :  { %v213_v20 = vmul.f32 %v548_v3, %v189_v43 }
  0xac   :  { %v99_v53 = vpop.permute.xlu0 %98  ;;  %v220_v32 = vadd.f32 %v213_v20, %v174_v23 }
  0xad   :  { %v127_v5 = vadd.f32 %v99_v53, %v85_v62 }
  0xae   :  { %v231_v45 = vpop.permute.xlu1 %230 }
  0xaf   :  { %v173_v16 = vadd.f32 %v166_v2, %v127_v5  ;;  %v258_v36 = vmul.f32 %v553_v11, %v231_v45  ;;  %v88_v45 = vmul.f32 %v536_v57, %v522_v46  ;;  %v90_v46 = vmul.f32 %v536_v57, %v526_v50 }
  0xb0   :  { %v109_v59 = vpop.permute.xlu0 %108 }
  0xb1   :  { %v129_v17 = vadd.f32 %v109_v59, %v87_v7  ;;  %v219_v27 = vadd.f32 %v212_v12, %v173_v16 }
  0xb3   :  { %v524_v47 = vpop.permute.xlu1 %113  ;;  %v175_v28 = vadd.f32 %v168_v19, %v129_v17  ;;  %v265_v38 = vadd.f32 %v258_v36, %v219_v27 }
  0xb4   :  { %v119_v6 = vpop.permute.xlu0 %118  ;;  %v130_v5 = vadd.f32 %v524_v47, %v88_v45 }
  0xb5   :  { %v272_v44 = vmax.f32 %v265_v38, 0.0  ;;  %v131_v7 = vadd.f32 %v119_v6, %v89_v35 }
  0xb8   :  { %v193_v49 = vpop.permute.xlu1 %192  ;;  %v286_v24 = vpop.permute.xlu0 %285 }
  0xb9   :  { %v214_v21 = vmul.f32 %v548_v3, %v193_v49  ;;  %v271_v49 = vmax.f32 %v264_v42, 0.0  ;;  %v314_v55 = vmul.f32 %v286_v24, %v272_v44 }
  0xbb   :  { %v221_v34 = vadd.f32 %v214_v21, %v175_v28 }
  0xbc   :  { %v291_v33 = vpop.permute.xlu0 %290 }
  0xbd   :  { %v235_v52 = vpop.permute.xlu1 %234  ;;  %v267_v43 = vadd.f32 %v260_v37, %v221_v34 }
  0xbe   :  { %v259_v29 = vmul.f32 %v553_v11, %v235_v52 }
  0xbf   :  { %v274_v58 = vmax.f32 %v267_v43, 0.0 }
  0xc0   :  { %v266_v39 = vadd.f32 %v259_v29, %v220_v32  ;;  %v296_v59 = vpop.permute.xlu0 %295 }
  0xc1   :  { %v316_v1 = vmul.f32 %v296_v59, %v274_v58 }
  0xc2   :  { %v155_v56 = vpop.permute.xlu1 %154  ;;  %v273_v48 = vmax.f32 %v266_v39, 0.0 }
  0xc3   :  { %v170_v62 = vmul.f32 %v544_v0, %v155_v56  ;;  %v176_v56 = vadd.f32 %v169_v10, %v130_v5 }
  0xc4   :  { %v315_v60 = vmul.f32 %v291_v33, %v273_v48 }
  0xc5   :  { %v177_v12 = vadd.f32 %v170_v62, %v131_v7 }
  0xc7   :  { %v542_v63 = vpop.permute.xlu1 %196  ;;  %v223_v50 = vadd.f32 %v216_v31, %v177_v12 }
  0xc8   :  { %v215_v13 = vmul.f32 %v548_v3, %v542_v63 }
  0xca   :  { %v222_v16 = vadd.f32 %v215_v13, %v176_v56 }
  0xcc   :  { %v124_v9 = vpop.permute.xlu1 %123 }
  0xcd   :  { %v132_v30 = vadd.f32 %v124_v9, %v90_v46 }
  0xd1   :  { %v159_v25 = vpop.permute.xlu1 %158 }
  0xd2   :  { %v171_v14 = vmul.f32 %v544_v0, %v159_v25  ;;  %v306_v25 = vpop.permute.xlu0 %305 }
  0xd4   :  { %v178_v57 = vadd.f32 %v171_v14, %v132_v30 }
  0xd6   :  { %v243_v41 = vpop.permute.xlu1 %242  ;;  %v337_v39 = vpop.permute.xlu0 %336 }
  0xd7   :  { %v261_v47 = vmul.f32 %v553_v11, %v243_v41  ;;  %v342_v42 = vrot.slane %v337_v39, %v82_v54 }
  0xd9   :  { %v268_v18 = vadd.f32 %v261_v47, %v222_v16 }
  0xdb   :  { %v281_v53 = vpop.permute.xlu1 %280  ;;  %v275_v0 = vmax.f32 %v268_v18, 0.0 }
  0xdc   :  { %v313_v52 = vmul.f32 %v281_v53, %v271_v49 }
  0xde   :  { %v320_v61 = vadd.f32 %v314_v55, %v313_v52 }
  0xe0   :  { %v321_v2 = vadd.f32 %v320_v61, %v315_v60  ;;  %v205_v4 = vpop.permute.xlu1 %204 }
  0xe1   :  { %v217_v17 = vmul.f32 %v548_v3, %v205_v4 }
  0xe2   :  { %v322_v8 = vadd.f32 %v321_v2, %v316_v1 }
  0xe3   :  { %v224_v40 = vadd.f32 %v217_v17, %v178_v57 }
  0xe5   :  { %v247_v6 = vpop.permute.xlu1 %246 }
  0xe6   :  { %v262_v15 = vmul.f32 %v553_v11, %v247_v6 }
  0xe8   :  { %v269_v19 = vadd.f32 %v262_v15, %v223_v50 }
  0xe9   :  { %v251_v63 = vpop.permute.xlu1 %250 }
  0xea   :  { %v263_v20 = vmul.f32 %v553_v11, %v251_v63  ;;  %v276_v21 = vmax.f32 %v269_v19, 0.0 }
  0xec   :  { %v270_v22 = vadd.f32 %v263_v20, %v224_v40  ;;  %v318_v26 = vmul.f32 %v306_v25, %v276_v21 }
  0xee   :  { %v301_v23 = vpop.permute.xlu1 %300  ;;  %v277_v28 = vmax.f32 %v270_v22, 0.0 }
  0xef   :  { %v317_v24 = vmul.f32 %v301_v23, %v275_v0 }
  0xf1   :  { %v323_v27 = vadd.f32 %v322_v8, %v317_v24 }
  0xf2   :  { %v311_v9 = vpop.permute.xlu1 %310 }
  0xf3   :  { %v324_v3 = vadd.f32 %v323_v27, %v318_v26  ;;  %v319_v29 = vmul.f32 %v311_v9, %v277_v28 }
  0xf5   :  { %v326_v32 = vsel %vm325_vm0, %v319_v29, 0.0 }
  0xf6   :  { %v327_v36 = vadd.f32 %v326_v32, %v324_v3 }
  0xf8   :  { %v328_v34 = vrot.slane %v327_v36, 4 }
  0xfa   :  { %v329_v37 = vadd.f32 %v328_v34, %v327_v36 }
  0xfc   :  { %v330_v38 = vrot.slane %v329_v37, 2 }
  0xfe   :  { %v331_v11 = vadd.f32 %v330_v38, %v329_v37 }
 0x100   :  { %v332_v41 = vrot.slane %v331_v11, 1 }
 0x102   :  { %v333_v33 = vadd.f32 %v332_v41, %v331_v11 }
 0x104   :  { %v343_v43 = vadd.f32 %v342_v42, %v333_v33 }
 0x106   :  { %v355_v44 = vmul.f32 -1.442695, %v343_v43 }
 0x108   :  { %382 = vpow2.f32 %v355_v44 }
 0x112   :  { %v383_v48 = vpop.eup %382 }
 0x113   :  { %v347_v49 = vadd.f32 1.0, %v383_v48 }
 0x115   :  { %384 = vrcp.f32 %v347_v49 }
 0x11f   :  { %v385_v53 = vpop.eup %384 }
 0x120   :  { %350 = vst [vmem:[%s595_s5] sm:$0x1] %v385_v53 }

</bundles_post_ra>
